<compile_context>
chip_gen: v5e
topology: v5e:2x2
jax: 0.10.0
libtpu: 0.0.40
codegen_flags: <defaults>
</compile_context>

<pallas_src>
import functools

import jax
import jax.numpy as jnp
from jax.experimental import pallas as pl
from jax.experimental.pallas import tpu as pltpu


def _round_up(x, m):
    return (x + m - 1) // m * m


def _vmem_capacity_bytes():
    """Physical VMEM of the current chip; 64 MiB fallback (v7x, the smallest)."""
    try:
        cap = getattr(pltpu.get_tpu_info(), "vmem_capacity_bytes", None)
        if cap:
            return int(cap)
    except Exception:
        pass
    return 64 * 1024 * 1024


def _decoder_kernel(z_ref, w1_ref, b1_ref, w2_ref, b2_ref, out_ref,
                    h_ref, m_ref, l_ref, *, v_actual):
    """One (batch-tile i, vocab-slab j) grid step.

    Grid: i -> "parallel" (megacore), j -> "arbitrary" (reduction-style).
    out_ref is the (tile_b, V_pad) row block, resident across the vocab axis.
    """
    j = pl.program_id(1)
    n_v = pl.num_programs(1)
    tile_v = w2_ref.shape[1]
    v_pad = out_ref.shape[1]
    n_v_static = v_pad // tile_v

    # ---- fc1 + ReLU once per batch tile; cached in VMEM across vocab slabs ----
    @pl.when(j == 0)
    def _():
        h = jnp.dot(z_ref[...], w1_ref[...],
                    preferred_element_type=jnp.float32) + b1_ref[...].astype(jnp.float32)
        h_ref[...] = jnp.maximum(h, 0.0).astype(h_ref.dtype)
        m_ref[...] = jnp.full_like(m_ref, -jnp.inf)   # running row max
        l_ref[...] = jnp.zeros_like(l_ref)            # running rescaled exp-sum

    # ---- fc2 for this vocab slab (f32 accumulation on the MXU) ----
    logits = jnp.dot(h_ref[...], w2_ref[...],
                     preferred_element_type=jnp.float32) + b2_ref[...].astype(jnp.float32)

    if v_pad != v_actual:   # static check: mask padded vocab lanes out of softmax
        col = j * tile_v + jax.lax.broadcasted_iota(jnp.int32, logits.shape, 1)
        logits = jnp.where(col < v_actual, logits, jnp.float32(-1e30))

    # ---- online-softmax statistics (VPU/XLU filler under the MXU slab dot) ----
    m_prev = m_ref[...]
    m_new = jnp.maximum(m_prev, jnp.max(logits, axis=-1, keepdims=True))
    l_ref[...] = (l_ref[...] * jnp.exp(m_prev - m_new)
                  + jnp.sum(jnp.exp(logits - m_new), axis=-1, keepdims=True))
    m_ref[...] = m_new

    # Raw logits -> resident output row block (lane-aligned slab store).
    if n_v_static == 1:
        out_ref[...] = logits.astype(out_ref.dtype)
    else:
        start = pl.multiple_of(j * tile_v, tile_v)
        out_ref[:, pl.ds(start, tile_v)] = logits.astype(out_ref.dtype)

    # ---- normalization epilogue: one in-place exp pass, chunked per slab ----
    @pl.when(j == n_v - 1)
    def _():
        m = m_ref[...]
        l = l_ref[...]
        inv_l = pl.reciprocal(l, approx=True)     # EUP slot
        inv_l = inv_l * (2.0 - l * inv_l)         # one Newton step -> ~exact norm

        if n_v_static == 1:
            full = out_ref[...].astype(jnp.float32)
            out_ref[...] = (jnp.exp(full - m) * inv_l).astype(out_ref.dtype)
        else:
            def body(s, carry):
                st = pl.multiple_of(s * tile_v, tile_v)
                blk = out_ref[:, pl.ds(st, tile_v)].astype(jnp.float32)
                out_ref[:, pl.ds(st, tile_v)] = (
                    jnp.exp(blk - m) * inv_l).astype(out_ref.dtype)
                return carry
            jax.lax.fori_loop(0, n_v_static, body, 0, unroll=(n_v_static <= 8))


def embed_align_decoder(z, w1_t, b1, w2_t, b2, *, tile_b=None, tile_v=None,
                        stream_dtype=None, out_dtype=jnp.float32):
    """softmax(relu(z @ w1_t + b1) @ w2_t + b2, axis=-1).

    z: (B, E).  w1_t: (E, E) pre-transposed (in, out).  b1: (E,) or (1, E).
    w2_t: (E, V) pre-transposed.  b2: (V,) or (1, V).
    stream_dtype: optionally stream z / W1 / W2 / relu-cache in e.g. bf16
      (halves the dominant W2 HBM traffic, full-rate MXU); accumulation,
      biases and softmax math stay f32.
    Returns (B, V) probabilities in out_dtype.
    """
    B, E = z.shape
    V = w2_t.shape[1]

    b1 = jnp.asarray(b1, jnp.float32).reshape(1, E)
    b2 = jnp.asarray(b2, jnp.float32).reshape(1, V)
    if stream_dtype is not None:
        z = z.astype(stream_dtype)
        w1_t = w1_t.astype(stream_dtype)
        w2_t = w2_t.astype(stream_dtype)
    h_dtype = stream_dtype if stream_dtype is not None else jnp.float32

    # --- vocab tiling: fixed wide slabs + zero padding (masked in-kernel) ---
    if tile_v is None:
        tile_v = min(2048, _round_up(V, 128))
    else:
        tile_v = max(128, _round_up(tile_v, 128))
    V_pad = _round_up(V, tile_v)
    if V_pad != V:
        w2_t = jnp.pad(w2_t, ((0, 0), (0, V_pad - V)))
        b2 = jnp.pad(b2, ((0, 0), (0, V_pad - V)))
    n_v = V_pad // tile_v

    isz_z = jnp.dtype(z.dtype).itemsize
    isz_w1 = jnp.dtype(w1_t.dtype).itemsize
    isz_w2 = jnp.dtype(w2_t.dtype).itemsize
    isz_out = jnp.dtype(out_dtype).itemsize
    isz_h = jnp.dtype(h_dtype).itemsize

    def _vmem_est(tb):
        w2_bufs = 1 if n_v == 1 else 2           # invariant slabs single-buffered
        return (2 * tb * E * isz_z               # z tile (double-buffered)
                + E * E * isz_w1 + E * 4         # fc1 weight/bias (single-buffered)
                + w2_bufs * (E * tile_v * isz_w2 + tile_v * 4)   # fc2 slabs
                + 2 * tb * V_pad * isz_out       # resident output row block
                + tb * E * isz_h + 2 * tb * 4)   # h / m / l scratch

    # Clamp to the chip's real VMEM minus ~10% headroom (v7x has only 64 MiB).
    budget = int(_vmem_capacity_bytes() * 0.9)

    if tile_b is None:
        tb = min(512, _round_up(B, 8))
        while tb > 8 and _vmem_est(tb) > budget:
            tb = max(8, _round_up(tb // 2, 8))
        # v7x megacore: give both TensorCores a batch tile when the batch allows.
        if B > 8 and (B + tb - 1) // tb == 1:
            half = _round_up((B + 1) // 2, 8)
            if half < tb:
                tb = half
        tile_b = tb
    else:
        tile_b = max(8, _round_up(tile_b, 8))

    B_pad = _round_up(B, tile_b)
    if B_pad != B:
        z = jnp.pad(z, ((0, B_pad - B), (0, 0)))
    n_b = B_pad // tile_b

    # No 2x fudge: estimate + small slack, clamped to the physical budget.
    vmem_limit = int(min(budget, max(16 << 20, _vmem_est(tile_b) + (4 << 20))))

    # Grid-invariant operands: single VMEM buffer (default is 2).
    invariant = functools.partial(pl.BlockSpec, pipeline_mode=pl.Buffered(1))
    fc2_spec = invariant if n_v == 1 else pl.BlockSpec

    kernel = functools.partial(_decoder_kernel, v_actual=V)

    out = pl.pallas_call(
        kernel,
        out_shape=jax.ShapeDtypeStruct((B_pad, V_pad), out_dtype),
        grid_spec=pltpu.PrefetchScalarGridSpec(
            num_scalar_prefetch=0,
            grid=(n_b, n_v),
            in_specs=[
                pl.BlockSpec((tile_b, E), lambda i, j: (i, 0)),    # z tile
                invariant((E, E), lambda i, j: (0, 0)),            # fc1 weight
                invariant((1, E), lambda i, j: (0, 0)),            # fc1 bias
                fc2_spec((E, tile_v), lambda i, j: (0, j)),        # fc2 weight slab
                fc2_spec((1, tile_v), lambda i, j: (0, j)),        # fc2 bias slab
            ],
            out_specs=pl.BlockSpec((tile_b, V_pad), lambda i, j: (i, 0)),
            scratch_shapes=[
                pltpu.VMEM((tile_b, E), h_dtype),       # relu(fc1(z)) cache
                pltpu.VMEM((tile_b, 1), jnp.float32),   # running row max
                pltpu.VMEM((tile_b, 1), jnp.float32),   # running exp-sum
            ],
        ),
        compiler_params=pltpu.CompilerParams(
            dimension_semantics=("parallel", "arbitrary"),
            vmem_limit_bytes=vmem_limit,
        ),
    )(z, w1_t, b1, w2_t, b2)

    if B_pad != B or V_pad != V:
        out = out[:B, :V]
    return out


def _reference(z, w1_t, b1, w2_t, b2):
    h = jnp.maximum(z @ w1_t + b1, 0.0)
    logits = h @ w2_t + b2
    return jax.nn.softmax(logits, axis=-1)


def _make_params(key, embed_size, vocab_size):
    k1, k2, k3, k4 = jax.random.split(key, 4)
    bound = 1.0 / float(embed_size) ** 0.5
    w1_t = jax.random.uniform(k1, (embed_size, embed_size), jnp.float32, -bound, bound)
    b1 = jax.random.uniform(k2, (1, embed_size), jnp.float32, -bound, bound)
    w2_t = jax.random.uniform(k3, (embed_size, vocab_size), jnp.float32, -bound, bound)
    b2 = jax.random.uniform(k4, (1, vocab_size), jnp.float32, -bound, bound)
    return w1_t, b1, w2_t, b2


if __name__ == "__main__":
    key = jax.random.PRNGKey(0)
    kz1, kz2, kp1, kp2 = jax.random.split(key, 4)

    # ---- Test 1: module-sized shapes (embed=32, vocab=128); single grid step. ----
    B1, E1, V1 = 8, 32, 128
    z1 = jax.random.normal(kz1, (B1, E1), dtype=jnp.float32)
    w1_t, b1, w2_t, b2 = _make_params(kp1, E1, V1)
    out1 = jax.block_until_ready(embed_align_decoder(z1, w1_t, b1, w2_t, b2))
    ref1 = _reference(z1, w1_t, b1, w2_t, b2)
    assert out1.shape == (B1, V1)
    assert jnp.allclose(out1, ref1, atol=5e-3, rtol=5e-3), "f32 single-slab mismatch"
    assert jnp.allclose(jnp.sum(out1, axis=-1), 1.0, atol=1e-3)

    # ---- Test 2: non-aligned batch & vocab -> padding + lane masking, two batch
    #      tiles, two vocab slabs, online softmax + chunked epilogue. ----
    B2, E2, V2 = 12, 32, 200
    z2 = jax.random.normal(kz2, (B2, E2), dtype=jnp.float32)
    w1_t2, b1_2, w2_t2, b2_2 = _make_params(kp2, E2, V2)
    out2 = jax.block_until_ready(
        embed_align_decoder(z2, w1_t2, b1_2, w2_t2, b2_2, tile_v=128))
    ref2 = _reference(z2, w1_t2, b1_2, w2_t2, b2_2)
    assert out2.shape == (B2, V2)
    assert jnp.allclose(out2, ref2, atol=5e-3, rtol=5e-3), "f32 multi-slab mismatch"
    assert jnp.allclose(jnp.sum(out2, axis=-1), 1.0, atol=1e-3)

    # ---- Test 3: bf16 weight/activation streaming with f32 accumulation. ----
    out3 = jax.block_until_ready(
        embed_align_decoder(z2, w1_t2, b1_2, w2_t2, b2_2, tile_v=128,
                            stream_dtype=jnp.bfloat16))
    assert out3.shape == (B2, V2)
    assert jnp.allclose(out3, ref2, atol=2e-2, rtol=2e-2), "bf16 stream mismatch"
    assert jnp.allclose(jnp.sum(out3, axis=-1), 1.0, atol=1e-2)

    print("KERNEL_OK")
</pallas_src>

<mosaic_0001>
module attributes {stable_mosaic.version = 11 : i64} {
  func.func @_decoder_kernel(%arg0: i32, %arg1: i32, %arg2: memref<8x32xf32, #tpu.memory_space<vmem>>, %arg3: memref<32x32xf32, #tpu.memory_space<vmem>>, %arg4: memref<1x32xf32, #tpu.memory_space<vmem>>, %arg5: memref<32x128xf32, #tpu.memory_space<vmem>>, %arg6: memref<1x128xf32, #tpu.memory_space<vmem>>, %arg7: memref<8x128xf32, #tpu.memory_space<vmem>>, %arg8: memref<8x32xf32, #tpu.memory_space<vmem>>, %arg9: memref<8x1xf32, #tpu.memory_space<vmem>>, %arg10: memref<8x1xf32, #tpu.memory_space<vmem>>) attributes {dimension_semantics = [#tpu.dimension_semantics<parallel>, #tpu.dimension_semantics<arbitrary>], iteration_bounds = array<i64: 1, 1>, scalar_prefetch = 0 : i64, scratch_operands = 3 : i64, tpu.core_type = #tpu.core_type<tc>, window_params = [{transform_indices = @transform_0, window_bounds = array<i64: 8, 32>}, {pipeline_mode = #tpu.pipeline_mode<synchronous>, transform_indices = @transform_1, window_bounds = array<i64: 32, 32>}, {pipeline_mode = #tpu.pipeline_mode<synchronous>, transform_indices = @transform_2, window_bounds = array<i64: 1, 32>}, {pipeline_mode = #tpu.pipeline_mode<synchronous>, transform_indices = @transform_3, window_bounds = array<i64: 32, 128>}, {pipeline_mode = #tpu.pipeline_mode<synchronous>, transform_indices = @transform_4, window_bounds = array<i64: 1, 128>}, {transform_indices = @transform_5, window_bounds = array<i64: 8, 128>}]} {
    %c0_i32 = arith.constant 0 : i32
    %0 = arith.cmpi eq, %arg1, %c0_i32 : i32
    %1 = arith.extui %0 : i1 to i32
    %c0_i32_0 = arith.constant 0 : i32
    %2 = arith.cmpi ne, %1, %c0_i32_0 : i32
    scf.if %2 {
      %c0_20 = arith.constant 0 : index
      %c0_21 = arith.constant 0 : index
      %29 = vector.load %arg2[%c0_20, %c0_21] : memref<8x32xf32, #tpu.memory_space<vmem>>, vector<8x32xf32>
      %c0_22 = arith.constant 0 : index
      %c0_23 = arith.constant 0 : index
      %30 = vector.load %arg3[%c0_22, %c0_23] : memref<32x32xf32, #tpu.memory_space<vmem>>, vector<32x32xf32>
      %cst_24 = arith.constant dense<0.000000e+00> : vector<8x32xf32>
      %31 = tpu.matmul %29, %30, %cst_24 {dimension_numbers = #tpu.dot_dimension_numbers<[1], [0], [0], [1], [0, 0, 1, 1], [], []>} : vector<8x32xf32>, vector<32x32xf32>, vector<8x32xf32> -> vector<8x32xf32>
      %c0_25 = arith.constant 0 : index
      %c0_26 = arith.constant 0 : index
      %32 = vector.load %arg4[%c0_25, %c0_26] : memref<1x32xf32, #tpu.memory_space<vmem>>, vector<1x32xf32>
      %33 = vector.broadcast %32 : vector<1x32xf32> to vector<8x32xf32>
      %34 = arith.addf %31, %33 : vector<8x32xf32>
      %cst_27 = arith.constant 0.000000e+00 : f32
      %35 = vector.broadcast %cst_27 : f32 to vector<8x32xf32>
      %36 = arith.maximumf %34, %35 : vector<8x32xf32>
      %c0_28 = arith.constant 0 : index
      %c0_29 = arith.constant 0 : index
      %37 = vector.load %arg8[%c0_28, %c0_29] : memref<8x32xf32, #tpu.memory_space<vmem>>, vector<8x32xf32>
      tpu.vector_store %arg8[%c0_28, %c0_29], %36 {strides = array<i32>} : memref<8x32xf32, #tpu.memory_space<vmem>>, vector<8x32xf32>,
      %cst_30 = arith.constant 0xFF800000 : f32
      %38 = vector.broadcast %cst_30 : f32 to vector<8x1xf32>
      %c0_31 = arith.constant 0 : index
      %c0_32 = arith.constant 0 : index
      %39 = vector.load %arg9[%c0_31, %c0_32] : memref<8x1xf32, #tpu.memory_space<vmem>>, vector<8x1xf32>
      tpu.vector_store %arg9[%c0_31, %c0_32], %38 {strides = array<i32>} : memref<8x1xf32, #tpu.memory_space<vmem>>, vector<8x1xf32>,
      %cst_33 = arith.constant 0.000000e+00 : f32
      %40 = vector.broadcast %cst_33 : f32 to vector<8x1xf32>
      %c0_34 = arith.constant 0 : index
      %c0_35 = arith.constant 0 : index
      %41 = vector.load %arg10[%c0_34, %c0_35] : memref<8x1xf32, #tpu.memory_space<vmem>>, vector<8x1xf32>
      tpu.vector_store %arg10[%c0_34, %c0_35], %40 {strides = array<i32>} : memref<8x1xf32, #tpu.memory_space<vmem>>, vector<8x1xf32>,
    } else {
    }
    %c0 = arith.constant 0 : index
    %c0_1 = arith.constant 0 : index
    %3 = vector.load %arg8[%c0, %c0_1] : memref<8x32xf32, #tpu.memory_space<vmem>>, vector<8x32xf32>
    %c0_2 = arith.constant 0 : index
    %c0_3 = arith.constant 0 : index
    %4 = vector.load %arg5[%c0_2, %c0_3] : memref<32x128xf32, #tpu.memory_space<vmem>>, vector<32x128xf32>
    %cst = arith.constant dense<0.000000e+00> : vector<8x128xf32>
    %5 = tpu.matmul %3, %4, %cst {dimension_numbers = #tpu.dot_dimension_numbers<[1], [0], [0], [1], [0, 0, 1, 1], [], []>} : vector<8x32xf32>, vector<32x128xf32>, vector<8x128xf32> -> vector<8x128xf32>
    %c0_4 = arith.constant 0 : index
    %c0_5 = arith.constant 0 : index
    %6 = vector.load %arg6[%c0_4, %c0_5] : memref<1x128xf32, #tpu.memory_space<vmem>>, vector<1x128xf32>
    %7 = vector.broadcast %6 : vector<1x128xf32> to vector<8x128xf32>
    %8 = arith.addf %5, %7 : vector<8x128xf32>
    %c0_6 = arith.constant 0 : index
    %c0_7 = arith.constant 0 : index
    %9 = vector.load %arg9[%c0_6, %c0_7] : memref<8x1xf32, #tpu.memory_space<vmem>>, vector<8x1xf32>
    %cst_8 = arith.constant dense<0xFF800000> : vector<8xf32>
    %10 = vector.multi_reduction <maximumf>, %8, %cst_8 [1] : vector<8x128xf32> to vector<8xf32>
    %11 = vector.shape_cast %10 : vector<8xf32> to vector<8x1xf32>
    %12 = arith.maximumf %9, %11 : vector<8x1xf32>
    %c0_9 = arith.constant 0 : index
    %c0_10 = arith.constant 0 : index
    %13 = vector.load %arg10[%c0_9, %c0_10] : memref<8x1xf32, #tpu.memory_space<vmem>>, vector<8x1xf32>
    %14 = arith.subf %9, %12 : vector<8x1xf32>
    %15 = math.exp %14 : vector<8x1xf32>
    %16 = arith.mulf %13, %15 : vector<8x1xf32>
    %17 = vector.broadcast %12 : vector<8x1xf32> to vector<8x128xf32>
    %18 = arith.subf %8, %17 : vector<8x128xf32>
    %19 = math.exp %18 : vector<8x128xf32>
    %cst_11 = arith.constant dense<0.000000e+00> : vector<8xf32>
    %20 = vector.multi_reduction <add>, %19, %cst_11 [1] : vector<8x128xf32> to vector<8xf32>
    %21 = vector.shape_cast %20 : vector<8xf32> to vector<8x1xf32>
    %22 = arith.addf %16, %21 : vector<8x1xf32>
    %c0_12 = arith.constant 0 : index
    %c0_13 = arith.constant 0 : index
    %23 = vector.load %arg10[%c0_12, %c0_13] : memref<8x1xf32, #tpu.memory_space<vmem>>, vector<8x1xf32>
    tpu.vector_store %arg10[%c0_12, %c0_13], %22 {strides = array<i32>} : memref<8x1xf32, #tpu.memory_space<vmem>>, vector<8x1xf32>,
    %c0_14 = arith.constant 0 : index
    %c0_15 = arith.constant 0 : index
    %24 = vector.load %arg9[%c0_14, %c0_15] : memref<8x1xf32, #tpu.memory_space<vmem>>, vector<8x1xf32>
    tpu.vector_store %arg9[%c0_14, %c0_15], %12 {strides = array<i32>} : memref<8x1xf32, #tpu.memory_space<vmem>>, vector<8x1xf32>,
    %c0_16 = arith.constant 0 : index
    %c0_17 = arith.constant 0 : index
    %25 = vector.load %arg7[%c0_16, %c0_17] : memref<8x128xf32, #tpu.memory_space<vmem>>, vector<8x128xf32>
    tpu.vector_store %arg7[%c0_16, %c0_17], %8 {strides = array<i32>} : memref<8x128xf32, #tpu.memory_space<vmem>>, vector<8x128xf32>,
    %c0_i32_18 = arith.constant 0 : i32
    %26 = arith.cmpi eq, %arg1, %c0_i32_18 : i32
    %27 = arith.extui %26 : i1 to i32
    %c0_i32_19 = arith.constant 0 : i32
    %28 = arith.cmpi ne, %27, %c0_i32_19 : i32
    scf.if %28 {
      %c0_20 = arith.constant 0 : index
      %c0_21 = arith.constant 0 : index
      %29 = vector.load %arg9[%c0_20, %c0_21] : memref<8x1xf32, #tpu.memory_space<vmem>>, vector<8x1xf32>
      %c0_22 = arith.constant 0 : index
      %c0_23 = arith.constant 0 : index
      %30 = vector.load %arg10[%c0_22, %c0_23] : memref<8x1xf32, #tpu.memory_space<vmem>>, vector<8x1xf32>
      %31 = tpu.reciprocal %30 {approx = true} : vector<8x1xf32> -> vector<8x1xf32>
      %32 = arith.mulf %30, %31 : vector<8x1xf32>
      %cst_24 = arith.constant 2.000000e+00 : f32
      %33 = vector.broadcast %cst_24 : f32 to vector<8x1xf32>
      %34 = arith.subf %33, %32 : vector<8x1xf32>
      %35 = arith.mulf %31, %34 : vector<8x1xf32>
      %c0_25 = arith.constant 0 : index
      %c0_26 = arith.constant 0 : index
      %36 = vector.load %arg7[%c0_25, %c0_26] : memref<8x128xf32, #tpu.memory_space<vmem>>, vector<8x128xf32>
      %37 = vector.broadcast %29 : vector<8x1xf32> to vector<8x128xf32>
      %38 = arith.subf %36, %37 : vector<8x128xf32>
      %39 = math.exp %38 : vector<8x128xf32>
      %40 = vector.broadcast %35 : vector<8x1xf32> to vector<8x128xf32>
      %41 = arith.mulf %39, %40 : vector<8x128xf32>
      %c0_27 = arith.constant 0 : index
      %c0_28 = arith.constant 0 : index
      %42 = vector.load %arg7[%c0_27, %c0_28] : memref<8x128xf32, #tpu.memory_space<vmem>>, vector<8x128xf32>
      tpu.vector_store %arg7[%c0_27, %c0_28], %41 {strides = array<i32>} : memref<8x128xf32, #tpu.memory_space<vmem>>, vector<8x128xf32>,
    } else {
    }
    return
  }
  func.func @transform_0(%arg0: i32, %arg1: i32) -> (i32, i32) {
    %c0_i32 = arith.constant 0 : i32
    %c0_i32_0 = arith.constant 0 : i32
    return %arg0, %c0_i32 : i32, i32
  }
  func.func @transform_1(%arg0: i32, %arg1: i32) -> (i32, i32) {
    %c0_i32 = arith.constant 0 : i32
    %c0_i32_0 = arith.constant 0 : i32
    %c0_i32_1 = arith.constant 0 : i32
    return %c0_i32, %c0_i32_0 : i32, i32
  }
  func.func @transform_2(%arg0: i32, %arg1: i32) -> (i32, i32) {
    %c0_i32 = arith.constant 0 : i32
    %c0_i32_0 = arith.constant 0 : i32
    %c0_i32_1 = arith.constant 0 : i32
    return %c0_i32, %c0_i32_0 : i32, i32
  }
  func.func @transform_3(%arg0: i32, %arg1: i32) -> (i32, i32) {
    %c0_i32 = arith.constant 0 : i32
    %c0_i32_0 = arith.constant 0 : i32
    return %c0_i32, %arg1 : i32, i32
  }
  func.func @transform_4(%arg0: i32, %arg1: i32) -> (i32, i32) {
    %c0_i32 = arith.constant 0 : i32
    %c0_i32_0 = arith.constant 0 : i32
    return %c0_i32, %arg1 : i32, i32
  }
  func.func @transform_5(%arg0: i32, %arg1: i32) -> (i32, i32) {
    %c0_i32 = arith.constant 0 : i32
    %c0_i32_0 = arith.constant 0 : i32
    return %arg0, %c0_i32 : i32, i32
  }
}

</mosaic_0001>

<bundles_post_ra>
// kernel: tpu_custom_call.1
= control target key start
LH: loop header
LB: loop body
LE: loop exit
PB: predicated region body
PF: predicated region fallthrough
CT: control target
= control target key end

     0   :  { %10 = vsyncpa [#allocation6], 0  ;;  %s398_s0 = inlined_call_operand.hbm [shape: f32[8,32], index: 0, kind: input, shape index: {}]   ;;  %s399_s1 = inlined_call_operand.hbm [shape: f32[32,32], index: 1, kind: input, shape index: {}]   ;;  %s400_s2 = inlined_call_operand.vmem [shape: f32[1,32], index: 2, kind: input, shape index: {}]   ;;  %s401_s3 = inlined_call_operand.hbm [shape: f32[32,128], index: 3, kind: input, shape index: {}]   ;;  %s402_s4 = inlined_call_operand.vmem [shape: f32[1,128], index: 4, kind: input, shape index: {}]   ;;  %s403_s5 = inlined_call_operand.hbm [shape: f32[8,128], index: 5, kind: output, shape index: {}]  }
   0x1   :  { %11 = vsyncpa [#allocation9], 0  ;;  %s28_s20 = sshll.u32 %s399_s1, 4  ;;  %s29_s20 = int_to_ptr.hbm [resolvable:$true] %s28_s20 }
   0x2   :  { %12 = vsyncpa [#allocation7], 0  ;;  %s334_s21 = smov [#allocation8]   ;;  %s18_s25 = sshll.u32 %s398_s0, 4  ;;  %s19_s25 = int_to_ptr.hbm [resolvable:$true] %s18_s25 }
   0x3   :  { %s30_s22 = sshll.u32 %s334_s21, 4  ;;  %s335_s26 = smov 128   ;;  %s31_s22 = int_to_ptr.vmem [resolvable:$true] %s30_s22 }
   0x4   :  { %s336_s27 = smov 8   ;;  %s337_s28 = smov [#allocation5]  }
   0x5   :  { %36 = dma.hbm_to_vmem [thread:$0]  %s29_s20, 512, %s31_s22, [#allocation9], %s335_s26, %s335_s26, %s336_s27  }
   0x6   :  { %s20_s29 = sshll.u32 %s337_s28, 4  ;;  %s43_s7 = sshll.u32 %s401_s3, 4  ;;  %s21_s29 = int_to_ptr.vmem [resolvable:$true] %s20_s29  ;;  %s44_s7 = int_to_ptr.hbm [resolvable:$true] %s43_s7 }
   0x7   :  { %23 = dma.hbm_to_vmem [thread:$0]  %s19_s25, 128, %s21_s29, [#allocation6]  }
   0x8   :  { %s338_s1 = smov [#allocation10]  }
   0x9   :  { %s45_s8 = sshll.u32 %s338_s1, 4  ;;  %s46_s8 = int_to_ptr.vmem [resolvable:$true] %s45_s8 }
   0xa   :  { %51 = dma.hbm_to_vmem [thread:$0]  %s44_s7, 512, %s46_s8, [#allocation9], %s335_s26, %s335_s26, %s336_s27  }
   0xb   :  { %328 = dma.done.wait [#allocation6], 128  }
   0xc   :  { %329 = vsyncadd [#allocation6], 4294967168 }
   0xd   :  { %330 = dma.done.wait [#allocation9], 1024  }
   0xe   :  { %331 = vsyncadd [#allocation9], 4294966272  ;;  %v74_v0 = vld [vmem:[#allocation8 + $0x18] sm:$0xff]  ;;  %v73_v1 = vld [vmem:[#allocation8 + $0x10] sm:$0xff]  ;;  %vm79_vm0 = vcmask 261120   ;;  %vm105_vm1 = vcmask 7168  }
   0xf   :  { %95 = vmatpush.msra.mxu0 %v74_v0  ;;  %v72_v2 = vld [vmem:[#allocation8 + $0x8] sm:$0xff]  ;;  %v71_v3 = vld [vmem:[#allocation8] sm:$0xff]  ;;  %v70_v4 = vld [vmem:[#allocation5] sm:$0xff]  ;;  %v339_v14 = vmov -inf   ;;  %v340_v18 = vmov 0   ;;  %v341_v19 = vmov 0.0  }
  0x10   :  { %v112_v5 = vld [vmem:[#allocation10 + $0x18] sm:$0xff]  ;;  %v111_v6 = vld [vmem:[#allocation10 + $0x10] sm:$0xff]  ;;  %v110_v7 = vld [vmem:[#allocation10 + $0x8] sm:$0xff]  ;;  %106 = vst.msk [vmem:[#allocation3] sm:$0xff] %vm105_vm1, %v339_v14  ;;  %219 = vset.pattern.permute.xlu0 %v340_v18  ;;  %220 = vset.pattern.permute.xlu1 %v340_v18  ;;  %s197_s13 = sshll.u32 %s403_s5, 4  ;;  %s198_s13 = int_to_ptr.hbm [resolvable:$true] %s197_s13 }
  0x11   :  { %96 = vmatpush.msra.mxu0 %v73_v1  ;;  %133 = vmatpush.msra.mxu1 %v112_v5  ;;  %v109_v8 = vld [vmem:[#allocation10] sm:$0xff]  ;;  %107 = vst.msk [vmem:[#allocation4] sm:$0xff] %vm105_vm1, %v341_v19 }
  0x12   :  { %v222_v9 = vld [vmem:[%s400_s2] ss:$0 sm:$0xff]  ;;  %221 = vset.pattern.permute.xlu2 %v340_v18  ;;  %s342_s2 = smov [#allocation11]  }
  0x13   :  { %97 = vmatpush.msra.mxu0 %v72_v2  ;;  %134 = vmatpush.msra.mxu1 %v111_v6  ;;  %v223_v15 = vld [vmem:[%s402_s4] ss:$0 sm:$0xff]  ;;  %s195_s4 = sshll.u32 %s342_s2, 4  ;;  %s196_s4 = int_to_ptr.vmem [resolvable:$true] %s195_s4 }
  0x15   :  { %98 = vmatpush.msra.mxu0 %v71_v3  ;;  %135 = vmatpush.msra.mxu1 %v110_v7 }
  0x16   :  { %208 = vmatmul.msk.f32.vlgmr.msra.gmra.mxu0 %vm79_vm0, %v70_v4 }
  0x17   :  { %136 = vmatpush.msra.mxu1 %v109_v8  ;;  %v141_v20 = vld [vmem:[#allocation3] sm:$0xff] }
  0x18   :  { %v145_v31 = vld [vmem:[#allocation4] sm:$0xff] }
  0x93   :  { %v100_v10 = vpop.f32.mrf.mxu0 }
  0x94   :  { %v101_v11 = vadd.f32 %v222_v9, %v100_v10 }
  0x96   :  { %v103_v12 = vmax.f32 %v101_v11, 0.0 }
  0x98   :  { %104 = vst.msk [vmem:[#allocation2] sm:$0xff] %vm79_vm0, %v103_v12 }
  0x9f   :  { %v108_v13 = vld [vmem:[#allocation2] sm:$0xff] }
  0xa0   :  { %209 = vmatmul.msk.f32.vlgmr.msra.gmra.mxu1 %vm79_vm0, %v108_v13 }
 0x11d   :  { %v138_v16 = vpop.f32.mrf.mxu1 }
 0x11e   :  { %v139_v17 = vadd.f32 %v223_v15, %v138_v16 }
 0x120   :  { %142 = vmax.xlane.f32.xlu0 %v139_v17 }
 0x193   :  { %v143_v21 = vpop.xlane.xlu0 %142 }
 0x194   :  { %v144_v22 = vmax.f32 %v141_v20, %v143_v21 }
 0x196   :  { %v146_v23 = vsub.f32 %v141_v20, %v144_v22  ;;  %163 = vst.msk [vmem:[#allocation3] sm:$0xff] %vm105_vm1, %v144_v22  ;;  %152 = vperm.xlu0 %219, %v144_v22  }
 0x198   :  { %v147_v29 = vmul.f32 1.442695, %v146_v23 }
 0x19d   :  { %v168_v28 = vld [vmem:[#allocation3] sm:$0xff] }
 0x208   :  { %v153_v24 = vpop.permute.xlu0 %152 }
 0x209   :  { %v155_v25 = vsub.f32 %v139_v17, %v153_v24 }
 0x20b   :  { %v156_v26 = vmul.f32 1.442695, %v155_v25 }
 0x20d   :  { %224 = vpow2.f32 %v156_v26 }
 0x20e   :  { %226 = vpow2.f32 %v147_v29 }
 0x213   :  { %v225_v27 = vpop.eup %224 }
 0x214   :  { %158 = vadd.xlane.f32.xlu1 %v225_v27  ;;  %v227_v30 = vpop.eup %226 }
 0x215   :  { %v149_v32 = vmul.f32 %v227_v30, %v145_v31 }
 0x22d   :  { %177 = vperm.xlu1 %220, %v168_v28  }
 0x287   :  { %v159_v33 = vpop.xlane.xlu1 %158 }
 0x288   :  { %v160_v34 = vadd.f32 %v159_v33, %v149_v32 }
 0x28a   :  { %162 = vst.msk [vmem:[#allocation4] sm:$0xff] %vm105_vm1, %v160_v34 }
 0x291   :  { %v169_v35 = vld [vmem:[#allocation4] sm:$0xff] }
 0x292   :  { %228 = vrcp.f32 %v169_v35 }
 0x298   :  { %v229_v36 = vpop.eup %228 }
 0x299   :  { %v171_v37 = vmul.f32 %v229_v36, %v169_v35 }
 0x29b   :  { %v172_v38 = vsub.f32 2.0, %v171_v37 }
 0x29d   :  { %v173_v39 = vmul.f32 %v229_v36, %v172_v38 }
 0x29f   :  { %185 = vperm.xlu2 %221, %v173_v39   ;;  %v178_v40 = vpop.permute.xlu1 %177 }
 0x2a0   :  { %v180_v41 = vsub.f32 %v139_v17, %v178_v40 }
 0x2a2   :  { %v181_v42 = vmul.f32 1.442695, %v180_v41 }
 0x2a4   :  { %230 = vpow2.f32 %v181_v42 }
 0x2aa   :  { %v231_v43 = vpop.eup %230 }
 0x2f9   :  { %v186_v44 = vpop.permute.xlu2 %185 }
 0x2fa   :  { %v188_v45 = vmul.f32 %v231_v43, %v186_v44 }
 0x2fc   :  { %189 = vst [vmem:[#allocation11] sm:$0xff] %v188_v45 }
 0x2fd   :  { %200 = dma.vmem_to_hbm [thread:$0]  %s196_s4, 128, %s198_s13, [#allocation7]  }
 0x2fe   :  { %332 = dma.done.wait [#allocation7], 128  }
 0x2ff   :  { %333 = vsyncadd [#allocation7], 4294967168 }
 0x300   :  { %205 = vsyncpa [#allocation6], 1 }
 0x301   :  { %206 = vsyncpa [#allocation9], 1 }
 0x302   :  { %207 = vsyncpa [#allocation7], 1 }

</bundles_post_ra>
